<compile_context>
chip_gen: v6e
topology: v6e:2x2x1
jax: 0.10.0
libtpu: 0.0.40
codegen_flags: <defaults>
</compile_context>

<pallas_src>
import functools

import jax
import jax.numpy as jnp
from jax.experimental import pallas as pl
from jax.experimental.pallas import tpu as pltpu


def _round_up(x, m):
    return (x + m - 1) // m * m


def ffn_kernel(x_ref, w1_ref, b1_ref, w2_ref, b2_ref, o_ref, acc_ref):
    # x_ref:  (tm, H)    token tile
    # w1_ref: (ti, H)    intermediate-weight tile (torch layout [I, H])
    # b1_ref: (1, ti)    intermediate-bias slice (f32)
    # w2_ref: (H, ti)    output-weight tile (torch layout [H, I])
    # b2_ref: (1, H)     output bias (f32)
    # o_ref:  (tm, H)    output tile (written on last I-step only)
    # acc_ref:(tm, H)    f32 VMEM accumulator, resident across the I axis
    j = pl.program_id(1)

    @pl.when(j == 0)
    def _():
        acc_ref[...] = jnp.zeros_like(acc_ref)

    x = x_ref[...]
    # h = x @ w1_tile.T + b1_tile  -> (tm, ti), accumulated in f32 on the MXU.
    h = jax.lax.dot_general(
        x, w1_ref[...],
        dimension_numbers=(((1,), (1,)), ((), ())),
        preferred_element_type=jnp.float32,
    ) + b1_ref[...]
    # SiLU in f32 on the VPU/EUP (kept f32 even when weights/x are bf16).
    h = h * jax.nn.sigmoid(h)
    # acc += h @ w2_tile.T  -> (tm, H)
    acc_ref[...] += jax.lax.dot_general(
        h.astype(w2_ref.dtype), w2_ref[...],
        dimension_numbers=(((1,), (1,)), ((), ())),
        preferred_element_type=jnp.float32,
    )

    @pl.when(j == pl.num_programs(1) - 1)
    def _():
        o_ref[...] = (acc_ref[...] + b2_ref[...]).astype(o_ref.dtype)


@functools.partial(
    jax.jit,
    static_argnames=("tm", "ti", "param_dtype", "vmem_limit_bytes"),
)
def feed_forward(hidden_states, w1, b1, w2, b2, *,
                 tm=256, ti=512, param_dtype=None,
                 vmem_limit_bytes=64 * 1024 * 1024):
    """hidden_states: [B, S, H]; w1: [I, H]; b1: [I]; w2: [H, I]; b2: [H]
    (PyTorch nn.Linear weight layout: [out_features, in_features]).

    Tuning notes:
      * tm: token tile; 256 feeds the full v6e/v7x MXU (use 128-512 on v5e).
      * ti: intermediate tile, multiple of 128 (e.g. ~512 on v7x's 64 MiB VMEM,
        1024-2048 on v6e with a raised vmem_limit_bytes).
      * param_dtype=jnp.bfloat16 on v6e/v7x halves weight traffic and uses the
        fast MXU path; accumulation stays f32 in-kernel.
    """
    B, S, H = hidden_states.shape
    I, H_in = w1.shape
    assert H_in == H and w2.shape == (H, I)

    x = hidden_states.reshape(B * S, H)
    M = x.shape[0]

    # Optional low-precision activations/weights (v6e/v7x fast path).
    if param_dtype is not None:
        x = x.astype(param_dtype)
        w1 = w1.astype(param_dtype)
        w2 = w2.astype(param_dtype)

    # Biases stay f32; they are added to f32 MXU accumulations.
    b1_2d = b1.reshape(1, I).astype(jnp.float32)
    b2_2d = b2.reshape(1, H).astype(jnp.float32)

    # Token tile: clamp to the (sublane-padded) token count, then pad tokens up
    # to a multiple of the tile so tm need not divide batch*seq.
    tm_eff = max(8, min(tm, _round_up(M, 8)))
    M_pad = _round_up(M, tm_eff)
    if M_pad != M:
        x = jnp.pad(x, ((0, M_pad - M), (0, 0)))

    # Intermediate tile: lane-dense (multiple of 128) divisor of I, else whole I.
    ti_eff = ti if (ti <= I and I % ti == 0) else I

    grid = (M_pad // tm_eff, I // ti_eff)

    out = pl.pallas_call(
        ffn_kernel,
        out_shape=jax.ShapeDtypeStruct((M_pad, H), hidden_states.dtype),
        grid_spec=pltpu.PrefetchScalarGridSpec(
            num_scalar_prefetch=0,
            grid=grid,
            in_specs=[
                pl.BlockSpec((tm_eff, H), lambda i, j: (i, 0)),    # x tokens
                pl.BlockSpec((ti_eff, H), lambda i, j: (j, 0)),    # w1 [I,H] tile
                pl.BlockSpec((1, ti_eff), lambda i, j: (0, j)),    # b1 slice
                pl.BlockSpec((H, ti_eff), lambda i, j: (0, j)),    # w2 [H,I] tile
                # b2 is grid-invariant and tiny; default buffering is harmless.
                pl.BlockSpec((1, H), lambda i, j: (0, 0)),         # b2
            ],
            out_specs=pl.BlockSpec((tm_eff, H), lambda i, j: (i, 0)),
            scratch_shapes=[pltpu.VMEM((tm_eff, H), jnp.float32)],
        ),
        compiler_params=pltpu.CompilerParams(
            dimension_semantics=("parallel", "arbitrary"),
            vmem_limit_bytes=vmem_limit_bytes,
        ),
    )(x, w1, b1_2d, w2, b2_2d)

    if M_pad != M:
        out = out[:M]
    return out.reshape(B, S, H)


def feed_forward_ref(hidden_states, w1, b1, w2, b2):
    h = jnp.einsum("bsh,ih->bsi", hidden_states, w1,
                   precision=jax.lax.Precision.HIGHEST) + b1
    h = h * jax.nn.sigmoid(h)
    return jnp.einsum("bsi,hi->bsh", h, w2,
                      precision=jax.lax.Precision.HIGHEST) + b2


if __name__ == "__main__":
    # Small config: hidden_size=32, intermediate_size=256, batch=2, seq=8.
    B, S, H, I = 2, 8, 32, 256

    key = jax.random.PRNGKey(0)
    k_x, k_w1, k_b1, k_w2, k_b2 = jax.random.split(key, 5)

    x = jax.random.normal(k_x, (B, S, H), dtype=jnp.float32)
    w1 = jax.random.normal(k_w1, (I, H), dtype=jnp.float32) * (1.0 / jnp.sqrt(H))
    b1 = jax.random.normal(k_b1, (I,), dtype=jnp.float32) * 0.01
    w2 = jax.random.normal(k_w2, (H, I), dtype=jnp.float32) * (1.0 / jnp.sqrt(I))
    b2 = jax.random.normal(k_b2, (H,), dtype=jnp.float32) * 0.01

    ref = feed_forward_ref(x, w1, b1, w2, b2)

    # f32 path; small tiles here so the demo exercises both grid axes
    # (2 token tiles x 2 intermediate tiles) and the accumulator init/finalize.
    out = feed_forward(x, w1, b1, w2, b2, tm=8, ti=128)
    out = jax.block_until_ready(out)
    assert out.shape == (B, S, H)
    assert jnp.allclose(out, ref, atol=1e-4, rtol=1e-4)

    # bf16 weights/activations (v6e/v7x fast path); f32 accumulation in-kernel.
    out_bf16 = feed_forward(x, w1, b1, w2, b2, tm=8, ti=128,
                            param_dtype=jnp.bfloat16)
    out_bf16 = jax.block_until_ready(out_bf16)
    assert jnp.allclose(out_bf16, ref, atol=5e-2, rtol=5e-2)

    print("KERNEL_OK")
</pallas_src>

<mosaic_0001>
module attributes {stable_mosaic.version = 11 : i64} {
  func.func @ffn_kernel(%arg0: i32, %arg1: i32, %arg2: memref<8x32xf32, #tpu.memory_space<vmem>>, %arg3: memref<128x32xf32, #tpu.memory_space<vmem>>, %arg4: memref<1x128xf32, #tpu.memory_space<vmem>>, %arg5: memref<32x128xf32, #tpu.memory_space<vmem>>, %arg6: memref<1x32xf32, #tpu.memory_space<vmem>>, %arg7: memref<8x32xf32, #tpu.memory_space<vmem>>, %arg8: memref<8x32xf32, #tpu.memory_space<vmem>>) attributes {dimension_semantics = [#tpu.dimension_semantics<parallel>, #tpu.dimension_semantics<arbitrary>], iteration_bounds = array<i64: 2, 2>, scalar_prefetch = 0 : i64, scratch_operands = 1 : i64, tpu.core_type = #tpu.core_type<tc>, window_params = [{transform_indices = @transform_0, window_bounds = array<i64: 8, 32>}, {transform_indices = @transform_1, window_bounds = array<i64: 128, 32>}, {transform_indices = @transform_2, window_bounds = array<i64: 1, 128>}, {transform_indices = @transform_3, window_bounds = array<i64: 32, 128>}, {pipeline_mode = #tpu.pipeline_mode<synchronous>, transform_indices = @transform_4, window_bounds = array<i64: 1, 32>}, {transform_indices = @transform_5, window_bounds = array<i64: 8, 32>}]} {
    %c0_i32 = arith.constant 0 : i32
    %0 = arith.cmpi eq, %arg1, %c0_i32 : i32
    %1 = arith.extui %0 : i1 to i32
    %c0_i32_0 = arith.constant 0 : i32
    %2 = arith.cmpi ne, %1, %c0_i32_0 : i32
    scf.if %2 {
      %cst_15 = arith.constant 0.000000e+00 : f32
      %23 = vector.broadcast %cst_15 : f32 to vector<8x32xf32>
      %c0_16 = arith.constant 0 : index
      %c0_17 = arith.constant 0 : index
      %24 = vector.load %arg8[%c0_16, %c0_17] : memref<8x32xf32, #tpu.memory_space<vmem>>, vector<8x32xf32>
      tpu.vector_store %arg8[%c0_16, %c0_17], %23 {strides = array<i32>} : memref<8x32xf32, #tpu.memory_space<vmem>>, vector<8x32xf32>,
    } else {
    }
    %c0 = arith.constant 0 : index
    %c0_1 = arith.constant 0 : index
    %3 = vector.load %arg2[%c0, %c0_1] : memref<8x32xf32, #tpu.memory_space<vmem>>, vector<8x32xf32>
    %c0_2 = arith.constant 0 : index
    %c0_3 = arith.constant 0 : index
    %4 = vector.load %arg3[%c0_2, %c0_3] : memref<128x32xf32, #tpu.memory_space<vmem>>, vector<128x32xf32>
    %cst = arith.constant dense<0.000000e+00> : vector<8x128xf32>
    %5 = tpu.matmul %3, %4, %cst {dimension_numbers = #tpu.dot_dimension_numbers<[1], [1], [0], [0], [0, 0, 1, 0], [], []>} : vector<8x32xf32>, vector<128x32xf32>, vector<8x128xf32> -> vector<8x128xf32>
    %c0_4 = arith.constant 0 : index
    %c0_5 = arith.constant 0 : index
    %6 = vector.load %arg4[%c0_4, %c0_5] : memref<1x128xf32, #tpu.memory_space<vmem>>, vector<1x128xf32>
    %7 = vector.broadcast %6 : vector<1x128xf32> to vector<8x128xf32>
    %8 = arith.addf %5, %7 : vector<8x128xf32>
    %9 = arith.negf %8 : vector<8x128xf32>
    %10 = math.exp %9 : vector<8x128xf32>
    %cst_6 = arith.constant 1.000000e+00 : f32
    %11 = vector.broadcast %cst_6 : f32 to vector<8x128xf32>
    %12 = arith.addf %11, %10 : vector<8x128xf32>
    %13 = arith.divf %11, %12 : vector<8x128xf32>
    %14 = arith.mulf %8, %13 : vector<8x128xf32>
    %c0_7 = arith.constant 0 : index
    %c0_8 = arith.constant 0 : index
    %15 = vector.load %arg8[%c0_7, %c0_8] : memref<8x32xf32, #tpu.memory_space<vmem>>, vector<8x32xf32>
    %c0_9 = arith.constant 0 : index
    %c0_10 = arith.constant 0 : index
    %16 = vector.load %arg5[%c0_9, %c0_10] : memref<32x128xf32, #tpu.memory_space<vmem>>, vector<32x128xf32>
    %cst_11 = arith.constant dense<0.000000e+00> : vector<8x32xf32>
    %17 = tpu.matmul %14, %16, %cst_11 {dimension_numbers = #tpu.dot_dimension_numbers<[1], [1], [0], [0], [0, 0, 1, 0], [], []>} : vector<8x128xf32>, vector<32x128xf32>, vector<8x32xf32> -> vector<8x32xf32>
    %18 = arith.addf %15, %17 : vector<8x32xf32>
    %c0_12 = arith.constant 0 : index
    %c0_13 = arith.constant 0 : index
    %19 = vector.load %arg8[%c0_12, %c0_13] : memref<8x32xf32, #tpu.memory_space<vmem>>, vector<8x32xf32>
    tpu.vector_store %arg8[%c0_12, %c0_13], %18 {strides = array<i32>} : memref<8x32xf32, #tpu.memory_space<vmem>>, vector<8x32xf32>,
    %c1_i32 = arith.constant 1 : i32
    %20 = arith.cmpi eq, %arg1, %c1_i32 : i32
    %21 = arith.extui %20 : i1 to i32
    %c0_i32_14 = arith.constant 0 : i32
    %22 = arith.cmpi ne, %21, %c0_i32_14 : i32
    scf.if %22 {
      %c0_15 = arith.constant 0 : index
      %c0_16 = arith.constant 0 : index
      %23 = vector.load %arg8[%c0_15, %c0_16] : memref<8x32xf32, #tpu.memory_space<vmem>>, vector<8x32xf32>
      %c0_17 = arith.constant 0 : index
      %c0_18 = arith.constant 0 : index
      %24 = vector.load %arg6[%c0_17, %c0_18] : memref<1x32xf32, #tpu.memory_space<vmem>>, vector<1x32xf32>
      %25 = vector.broadcast %24 : vector<1x32xf32> to vector<8x32xf32>
      %26 = arith.addf %23, %25 : vector<8x32xf32>
      %c0_19 = arith.constant 0 : index
      %c0_20 = arith.constant 0 : index
      %27 = vector.load %arg7[%c0_19, %c0_20] : memref<8x32xf32, #tpu.memory_space<vmem>>, vector<8x32xf32>
      tpu.vector_store %arg7[%c0_19, %c0_20], %26 {strides = array<i32>} : memref<8x32xf32, #tpu.memory_space<vmem>>, vector<8x32xf32>,
    } else {
    }
    return
  }
  func.func @transform_0(%arg0: i32, %arg1: i32) -> (i32, i32) {
    %c0_i32 = arith.constant 0 : i32
    %c0_i32_0 = arith.constant 0 : i32
    return %arg0, %c0_i32 : i32, i32
  }
  func.func @transform_1(%arg0: i32, %arg1: i32) -> (i32, i32) {
    %c0_i32 = arith.constant 0 : i32
    %c0_i32_0 = arith.constant 0 : i32
    return %arg1, %c0_i32 : i32, i32
  }
  func.func @transform_2(%arg0: i32, %arg1: i32) -> (i32, i32) {
    %c0_i32 = arith.constant 0 : i32
    %c0_i32_0 = arith.constant 0 : i32
    return %c0_i32, %arg1 : i32, i32
  }
  func.func @transform_3(%arg0: i32, %arg1: i32) -> (i32, i32) {
    %c0_i32 = arith.constant 0 : i32
    %c0_i32_0 = arith.constant 0 : i32
    return %c0_i32, %arg1 : i32, i32
  }
  func.func @transform_4(%arg0: i32, %arg1: i32) -> (i32, i32) {
    %c0_i32 = arith.constant 0 : i32
    %c0_i32_0 = arith.constant 0 : i32
    %c0_i32_1 = arith.constant 0 : i32
    return %c0_i32, %c0_i32_0 : i32, i32
  }
  func.func @transform_5(%arg0: i32, %arg1: i32) -> (i32, i32) {
    %c0_i32 = arith.constant 0 : i32
    %c0_i32_0 = arith.constant 0 : i32
    return %arg0, %c0_i32 : i32, i32
  }
}

</mosaic_0001>

<bundles_post_ra>
// kernel: feed_forward.1
= control target key start
LH: loop header
LB: loop body
LE: loop exit
PB: predicated region body
PF: predicated region fallthrough
CT: control target
= control target key end

     0   :  { %s1288_s0 = inlined_call_operand.vmem [shape: f32[16,32], index: 0, kind: input, shape index: {}]   ;;  %s1289_s1 = inlined_call_operand.vmem [shape: f32[256,32], index: 1, kind: input, shape index: {}]   ;;  %s1290_s2 = inlined_call_operand.vmem [shape: f32[1,256], index: 2, kind: input, shape index: {}]   ;;  %s1291_s3 = inlined_call_operand.vmem [shape: f32[32,256], index: 3, kind: input, shape index: {}]   ;;  %s1292_s4 = inlined_call_operand.vmem [shape: f32[1,32], index: 4, kind: input, shape index: {}]   ;;  %s1293_s5 = inlined_call_operand.hbm [shape: f32[16,32], index: 5, kind: output, shape index: {}]  }
   0x1   :  { %1300 = sst [smem:[#allocation13_spill]] %s1291_s3 }
   0x2   :  { %10 = vsyncpa [#allocation5], 0 }
   0x3   :  { %12 = vsyncpa [#allocation5 + $0x1], 0  ;;  %s1052_s18 = smov 0   ;;  %s1054_s19 = smov 0  }
   0x4   :  { %s1056_s20 = smov 0   ;;  %s1058_s21 = smov 0  }
   0x5   :  { %s1060_s22 = smov 0   ;;  %s1062_s23 = smov 0  }
   0x6   :  { %s1064_s24 = smov 0   ;;  %s1066_s25 = smov 0  }
   0x7   :  { %s1068_s26 = smov 0   ;;  %s1070_s27 = smov 0  }
   0x8 LB: > { %1301 = sst [smem:[#allocation7_spill]] %s996_s22  ;;  %s708_s28 = sadd.s32 4294967295, %s1016_s27   ;;  %s1016_s27 = sphi %s1070_s27, %s18_s27   ;;  %s1012_s26 = sphi %s1068_s26, %s1317_s26   ;;  %s1008_s25 = sphi %s1066_s25, %s1316_s25   ;;  %s1004_s24 = sphi %s1064_s24, %s1315_s24   ;;  %s1000_s23 = sphi %s1062_s23, %s1314_s23   ;;  %s996_s22 = sphi %s1060_s22, %s1313_s22   ;;  %s992_s21 = sphi %s1058_s21, %s1312_s21   ;;  %s988_s20 = sphi %s1056_s20, %s1320_s20   ;;  %s984_s19 = sphi %s1054_s19, %s1319_s19   ;;  %s980_s18 = sphi %s1052_s18, %s1318_s18  }
   0x9   : > { %1302 = sst [smem:[#allocation8_spill]] %s1008_s25  ;;  %s709_s29 = sadd.s32 4294967294, %s1016_s27  }
   0xa   : > { %1303 = sst [smem:[#allocation9_spill]] %s1012_s26  ;;  %s27_s30 = sadd.s32 1, %s1008_s25 }
   0xb   : > { %s30_s6 = sadd.s32 1, %s1012_s26  ;;  %p28_p0 = scmp.ge.s32.totalorder %s27_s30, 2 }
   0xc   : > { %s115_s7 = sadd.s32 1, %s996_s22  ;;  %p122_p1 = scmp.ne.s32.totalorder %s996_s22, %s992_s21 }
   0xd   : > { %p123_p2 = scmp.eq.s32.totalorder %s1016_s27, 0  ;;  %s1322_s30 = smov (%p28_p0, %s27_s30), 0 }
   0xe   : > { %1304 = sst [smem:[#allocation10_spill]] %s1322_s30  ;;  %s1324_s6 = smov (!%p28_p0, %s30_s6), %s1012_s26 }
   0xf   : > { %s112_s8 = ssub.s32 %s1008_s25, %s1322_s30  ;;  %p1115_p3 = por %p123_p2, %p122_p1 }
  0x10   : > { %p32_p4 = scmp.ge.s32.totalorder %s1324_s6, 2  ;;  %p113_p5 = scmp.eq.s32.totalorder %s112_s8, 0 }
  0x11   : > { %s162_s10 = sadd.s32 1, %s988_s20  ;;  %p172_p6 = scmp.ne.s32.totalorder %s988_s20, %s984_s19 }
  0x12   : > { %s1326_s6 = smov (%p32_p4, %s1324_s6), 0  ;;  %p173_p7 = scmp.eq.s32.totalorder %s708_s28, 3 }
  0x13   : > { %1306 = sst [smem:[#allocation11_spill]] %s1326_s6  ;;  %s159_s12 = ssub.s32 %s1012_s26, %s1326_s6 }
  0x14   : > { %s1125_s11 = scalar_select %p113_p5, %s996_s22, %s115_s7  }
  0x15   : > { %p160_p8 = scmp.eq.s32.totalorder %s159_s12, 0  ;;  %p178_p9 = scmp.ne.s32.totalorder %s984_s19, %s980_s18 }
  0x16   : > { %1307 = sst [smem:[#allocation12_spill]] %s1125_s11  ;;  %p1131_p10 = por %p173_p7, %p172_p6 }
  0x17   : > { %p179_p11 = scmp.eq.s32.totalorder %s709_s29, 3  ;;  %p711_p13 = scmp.ge.s32.totalorder %s1016_s27, 4 }
  0x18   : > { %s1136_s14 = scalar_select %p160_p8, %s988_s20, %s162_s10  }
  0x19   : > { %p1138_p12 = por %p179_p11, %p178_p9  ;;  %198 = sbr.rel (%p711_p13) target bundleno = 42 (0x2a), region = 20 }
  0x1e   : > { %223 = sbr.rel (!%p1115_p3) target bundleno = 42 (0x2a), region = 36  ;;  %s225_s16 = sand.u32 (%p1115_p3), 1, %s996_s22  }
  0x1f   : > { %s713_s17 = sshll.u32 (%p1115_p3), %s1008_s25, 3  ;;  %s712_s28 = sshll.u32 (%p1115_p3), %s225_s16, 5 }
  0x20   : > { %s1310_s3 = sld [smem:[#allocation13_spill]] (%p1115_p3)  ;;  %s227_s10 = scalar_lea.vmem (%p1115_p3), [#allocation3], %s712_s28 }
  0x26   : > { %s229_s29 = scalar_lea.vmem %s1310_s3, %s713_s17 }
  0x27   : > { %v264_v0 = vld [vmem:[%s229_s29] sm:$0xff]  ;;  %v266_v1 = vld [vmem:[%s229_s29 + $0x10] sm:$0xff] }
  0x28   : > { %v268_v2 = vld [vmem:[%s229_s29 + $0x20] sm:$0xff]  ;;  %265 = vst [vmem:[%s227_s10] sm:$0xff] %v264_v0  ;;  %267 = vst [vmem:[%s227_s10 + $0x8] sm:$0xff] %v266_v1  ;;  %v270_v3 = vld [vmem:[%s229_s29 + $0x30] sm:$0xff] }
  0x29   : > { %269 = vst [vmem:[%s227_s10 + $0x10] sm:$0xff] %v268_v2  ;;  %271 = vst [vmem:[%s227_s10 + $0x18] sm:$0xff] %v270_v3 }
  0x2a PF: > { %p714_p0 = scmp.ge.s32.totalorder %s1016_s27, 1  ;;  %p276_p1 = scmp.lt.s32.totalorder %s1016_s27, 5 }
  0x2c   : > { %p277_p2 = pnand %p714_p0, %p276_p1 }
  0x2d   : > { %s283_s9 = sand.u32 (!%p277_p2), 1, %s992_s21   ;;  %s1296_s12 = sand.u32 (!%p277_p2), 1, %s984_s19  }
  0x2e   : > { %280 = sbr.rel (%p277_p2) target bundleno = 587 (0x24b), region = 74  ;;  %s715_s16 = sshll.u32 (!%p277_p2), %s283_s9, 5 }
  0x2f   : > { %s1156_s17 = sshll.u32 (!%p277_p2), %s1296_s12, 3  ;;  %p322_p3 = scmp.lt.s32.totalorder (!%p277_p2), %s1004_s24, 1 }
  0x30   : > { %s718_s28 = sshll.u32 (!%p277_p2), %s1000_s23, 4  ;;  %p332_p5 = scmp.lt.s32.totalorder (!%p277_p2), %s1000_s23, 1 }
  0x31   : > { %p327_p4 = scmp.lt.s32.totalorder (!%p277_p2), %s718_s28, 31  ;;  %s1179_s22 = scalar_lea.vmem (!%p277_p2), [#allocation3], %s715_s16 }
  0x32   : > { %p720_p6 = scmp.ne.s32.totalorder (!%p277_p2), %s1000_s23, 0 }
  0x33   : > { %s323_s7 = scalar_select %p322_p3, %s1004_s24, 1 }
  0x34   : > { %s1328_s28 = smov (!%p327_p4, %s718_s28), 31 }
  0x35   : > { %s717_s8 = sshll.u32 %s323_s7, 3  ;;  %s719_s6 = sshll.u32 %s1328_s28, 3 }
  0x36   : > { %s1165_s3 = scalar_lea.vmem %s1288_s0, %s717_s8  ;;  %s1170_s9 = scalar_lea.vmem %s1289_s1, %s719_s6 }
  0x37   : > { %s1173_s12 = scalar_select %p332_p5, %s1000_s23, 1 }
  0x38   : > { %s321_s7 = scalar_lea.vmem [#allocation4], %s1156_s17  ;;  %338 = sbr.rel (%p720_p6) target bundleno = 63 (0x3f), region = 82 }
  0x39   : > { %s334_s11 = scalar_lea.vmem %s1290_s2, %s1173_s12 }
  0x3d   : > { %vm339_vm0 = vcmask 261120   ;;  %v1018_v4 = vmov 0.0  }
  0x3e   : > { %340 = vst.msk [vmem:[#allocation2] sm:$0xff] %vm339_vm0, %v1018_v4 }
  0x3f PF: > { %v357_v5 = vld [vmem:[%s1170_s9 + $0x78] sm:$0xff]  ;;  %vm365_vm1 = vcmask 261120   ;;  %v1019_v6 = vmov 0.0   ;;  %vm1020_vm2 = vmmov 0   ;;  %v356_v7 = vld [vmem:[%s1170_s9 + $0x70] sm:$0xff]  ;;  %v355_v8 = vld [vmem:[%s1170_s9 + $0x68] sm:$0xff] }
  0x40   : > { %768 = vmatprep.subr.mxu0 %v1019_v6  ;;  %800 = vmatprep.mubr.msk.f32.mxu0 %vm1020_vm2, %v1019_v6  ;;  %v354_v9 = vld [vmem:[%s1170_s9 + $0x60] sm:$0xff]  ;;  %v353_v10 = vld [vmem:[%s1170_s9 + $0x58] sm:$0xff]  ;;  %v352_v11 = vld [vmem:[%s1170_s9 + $0x50] sm:$0xff]  ;;  %p740_p7 = scmp.ne.s32.totalorder %s1000_s23, 1 }
  0x41   : > { %769 = vmatpush3.xpose.msk.msra.mxu0 %vm365_vm1, %v357_v5  ;;  %803 = vmatprep.subr.mxu1 %v1019_v6  ;;  %v351_v12 = vld [vmem:[%s1170_s9 + $0x48] sm:$0xff]  ;;  %v350_v13 = vld [vmem:[%s1170_s9 + $0x40] sm:$0xff]  ;;  %v349_v14 = vld [vmem:[%s1170_s9 + $0x38] sm:$0xff] }
  0x42   : > { %770 = vmatprep.subr.mxu0 %v1019_v6  ;;  %811 = vmatprep.mubr.msk.f32.mxu1 %vm1020_vm2, %v1019_v6  ;;  %v348_v15 = vld [vmem:[%s1170_s9 + $0x30] sm:$0xff]  ;;  %v347_v16 = vld [vmem:[%s1170_s9 + $0x28] sm:$0xff]  ;;  %v346_v17 = vld [vmem:[%s1170_s9 + $0x20] sm:$0xff] }
  0x43   : > { %v345_v18 = vld [vmem:[%s1170_s9 + $0x18] sm:$0xff]  ;;  %v344_v19 = vld [vmem:[%s1170_s9 + $0x10] sm:$0xff]  ;;  %v343_v20 = vld [vmem:[%s1170_s9 + $0x8] sm:$0xff] }
  0x44   : > { %v342_v21 = vld [vmem:[%s1170_s9] sm:$0xff]  ;;  %v497_v24 = vld [vmem:[%s1179_s22 + $0x10] sm:$0xff]  ;;  %v496_v25 = vld [vmem:[%s1179_s22 + $0x8] sm:$0xff] }
  0x45   : > { %771 = vmatpush3.xpose.msk.msra.mxu0 %vm365_vm1, %v356_v7  ;;  %v341_v22 = vld [vmem:[%s1165_s3] sm:$0xff]  ;;  %v495_v26 = vld [vmem:[%s1179_s22] sm:$0xff] }
  0x46   : > { %772 = vmatprep.subr.mxu0 %v1019_v6  ;;  %v498_v23 = vld [vmem:[%s1179_s22 + $0x18] sm:$0xff] }
  0x47   : > { %804 = vmatpush3.xpose.msra.mxu1 %v498_v23  ;;  %v721_v27 = vld [vmem:[%s334_s11] ss:$0 sm:$0xff] }
  0x48   : > { %805 = vmatprep.subr.mxu1 %v1019_v6  ;;  %v494_v36 = vld [vmem:[#allocation2] sm:$0xff] }
  0x49   : > { %773 = vmatpush3.xpose.msk.msra.mxu0 %vm365_vm1, %v355_v8 }
  0x4a   : > { %774 = vmatprep.subr.mxu0 %v1019_v6 }
  0x4b   : > { %806 = vmatpush3.xpose.msra.mxu1 %v497_v24 }
  0x4c   : > { %807 = vmatprep.subr.mxu1 %v1019_v6 }
  0x4d   : > { %775 = vmatpush3.xpose.msk.msra.mxu0 %vm365_vm1, %v354_v9 }
  0x4e   : > { %776 = vmatprep.subr.mxu0 %v1019_v6 }
  0x4f   : > { %808 = vmatpush3.xpose.msra.mxu1 %v496_v25 }
  0x50   : > { %809 = vmatprep.subr.mxu1 %v1019_v6 }
  0x51   : > { %777 = vmatpush3.xpose.msk.msra.mxu0 %vm365_vm1, %v353_v10 }
  0x52   : > { %778 = vmatprep.subr.mxu0 %v1019_v6 }
  0x53   : > { %810 = vmatpush3.xpose.msra.mxu1 %v495_v26 }
  0x55   : > { %779 = vmatpush3.xpose.msk.msra.mxu0 %vm365_vm1, %v352_v11 }
  0x56   : > { %780 = vmatprep.subr.mxu0 %v1019_v6 }
  0x59   : > { %781 = vmatpush3.xpose.msk.msra.mxu0 %vm365_vm1, %v351_v12 }
  0x5a   : > { %782 = vmatprep.subr.mxu0 %v1019_v6 }
  0x5d   : > { %783 = vmatpush3.xpose.msk.msra.mxu0 %vm365_vm1, %v350_v13 }
  0x5e   : > { %784 = vmatprep.subr.mxu0 %v1019_v6 }
  0x61   : > { %785 = vmatpush3.xpose.msk.msra.mxu0 %vm365_vm1, %v349_v14 }
  0x62   : > { %786 = vmatprep.subr.mxu0 %v1019_v6 }
  0x65   : > { %787 = vmatpush3.xpose.msk.msra.mxu0 %vm365_vm1, %v348_v15 }
  0x66   : > { %788 = vmatprep.subr.mxu0 %v1019_v6 }
  0x69   : > { %789 = vmatpush3.xpose.msk.msra.mxu0 %vm365_vm1, %v347_v16 }
  0x6a   : > { %790 = vmatprep.subr.mxu0 %v1019_v6 }
  0x6d   : > { %791 = vmatpush3.xpose.msk.msra.mxu0 %vm365_vm1, %v346_v17 }
  0x6e   : > { %792 = vmatprep.subr.mxu0 %v1019_v6 }
  0x71   : > { %793 = vmatpush3.xpose.msk.msra.mxu0 %vm365_vm1, %v345_v18 }
  0x72   : > { %794 = vmatprep.subr.mxu0 %v1019_v6 }
  0x75   : > { %795 = vmatpush3.xpose.msk.msra.mxu0 %vm365_vm1, %v344_v19 }
  0x76   : > { %796 = vmatprep.subr.mxu0 %v1019_v6 }
  0x79   : > { %797 = vmatpush3.xpose.msk.msra.mxu0 %vm365_vm1, %v343_v20 }
  0x7a   : > { %798 = vmatprep.subr.mxu0 %v1019_v6 }
  0x7d   : > { %799 = vmatpush3.xpose.msk.msra.mxu0 %vm365_vm1, %v342_v21 }
  0x80   : > { %801 = vmatmul.mubr.msk.f32.vlgmr.msra.gmra.mxu0 %vm365_vm1, %v341_v22 }
 0x140   : > { %v483_v28 = vpop.f32.mrf.mxu0 }
 0x141   : > { %v484_v29 = vadd.f32 %v721_v27, %v483_v28 }
 0x142   : > { %v802_v30 = vpop.f32.mrf.mxu0 }
 0x143   : > { %v739_v31 = vmul.f32 -1.442695, %v484_v29 }
 0x145   : > { %904 = vpow2.f32 %v739_v31 }
 0x152   : > { %v905_v32 = vpop.eup %904 }
 0x153   : > { %v490_v33 = vadd.f32 1.0, %v905_v32 }
 0x155   : > { %906 = vrcp.f32 %v490_v33 }
 0x162   : > { %v907_v34 = vpop.eup %906 }
 0x163   : > { %v493_v35 = vmul.f32 %v907_v34, %v484_v29 }
 0x165   : > { %812 = vmatmul.mubr.f32.vlgmr.msra.gmra.mxu1 %v493_v35 }
 0x224   : > { %574 = sbr.rel (%p740_p7) target bundleno = 563 (0x233), region = 86 }
 0x225   : > { %v565_v37 = vpop.f32.mrf.mxu1 }
 0x226   : > { %v569_v38 = vadd.f32 %v565_v37, %v494_v36 }
 0x227   : > { %v813_v39 = vpop.f32.mrf.mxu1 }
 0x228   : > { %570 = vst.msk [vmem:[#allocation2] sm:$0xff] %vm365_vm1, %v569_v38 }
 0x229   : > { %v741_v41 = vld [vmem:[%s1292_s4] ss:$0 sm:$0xff] }
 0x22f   : > { %v575_v40 = vld [vmem:[#allocation2] sm:$0xff] }
 0x230   : > { %v583_v42 = vadd.f32 %v741_v41, %v575_v40 }
 0x232   : > { %584 = vst.msk [vmem:[%s321_s7] sm:$0xff] %vm365_vm1, %v583_v42 }
 0x233 PF: > { %s743_s30 = sshll.u32 %s1004_s24, 7  ;;  %s599_s12 = sshll.u32 %s321_s7, 4  ;;  %s600_s12 = int_to_ptr.vmem [resolvable:$true] %s599_s12 }
 0x234   : > { %s597_s23 = scalar_lea.hbm %s1293_s5, %s743_s30  ;;  %s1311_s16 = sand.u32 1, %s984_s19  }
 0x235   : > { %s586_s28 = scalar_lea.sflag [#allocation5], %s1311_s16  ;;  %s908_s8 = scalar_lea.vmem %s600_s12, 128 }
 0x236   : > { %p909_p8 = scmp.ne.s32.totalorder %s600_s12, %s908_s8  ;;  %s1021_s29 = smov [#allocation4]  }
 0x237   : > { %s912_s10 = sshll.u32 %s1021_s29, 4  ;;  %s913_s10 = int_to_ptr.vmem [resolvable:$false] %s912_s10 }
 0x238   : > { %p910_p9 = pnand %p909_p8, %p1131_p10  ;;  %s914_s21 = scalar_lea.vmem %s913_s10, 256 }
 0x239   : > { %p915_p13 = scmp.lt.s32.totalorder %s600_s12, %s913_s10  ;;  %p916_p0 = scmp.lt.s32.totalorder %s914_s21, %s908_s8 }
 0x23a   : > { %p911_p11 = pneg %p910_p9 }
 0x23b   : > { %p917_p1 = por %p916_p0, %p915_p13 }
 0x23d   : > { %p918_p2 = pnand %p917_p1, %p911_p11 }
 0x23f   : > { %921 = shalt.err (!%p918_p2)
}
 0x240   : > { %s922_s24 = scalar_lea.hbm %s597_s23, 128  ;;  %s926_s7 = scalar_lea.hbm %s1293_s5, 256 }
 0x241   : > { %p923_p3 = scmp.ne.s32.totalorder %s597_s23, %s922_s24  ;;  %p927_p6 = scmp.lt.s32.totalorder %s597_s23, %s1293_s5 }
 0x242   : > { %p928_p7 = scmp.lt.s32.totalorder %s926_s7, %s922_s24 }
 0x243   : > { %p924_p4 = pnand %p923_p3, %p1131_p10 }
 0x244   : > { %p929_p8 = por %p928_p7, %p927_p6 }
 0x245   : > { %p925_p5 = pneg %p924_p4 }
 0x247   : > { %p930_p9 = pnand %p929_p8, %p925_p5 }
 0x249   : > { %933 = shalt.err (!%p930_p9)
}
 0x24a   : > { %814 = dma.vmem_to_hbm [thread:$0]  (%p1131_p10), %s600_s12, 128, %s597_s23, %s586_s28  }
 0x24b PF: > { %p820_p11 = scmp.ge.s32.totalorder %s1016_s27, 2  ;;  %s611_s3 = sand.u32 1, %s980_s18  }
 0x24c   : > { %s612_s22 = scalar_lea.sflag [#allocation5], %s611_s3 }
 0x24d   : > { %p817_p13 = pnand %p820_p11, %p1138_p12 }
 0x24f   : > { %p818_p0 = pneg %p817_p13 }
 0x251   : > { %975 = dma.done.wait (%p818_p0), %s612_s22, 128  }
 0x252   : > { %977 = vsyncadd (%p818_p0), %s612_s22, 4294967168  ;;  %s18_s27 = sadd.s32 1, %s1016_s27   ;;  %s1312_s21 = sld [smem:[#allocation7_spill]] }
 0x253   : > { %p15_p1 = scmp.ge.s32.totalorder %s18_s27, 6   ;;  %s1313_s22 = sld [smem:[#allocation12_spill]] }
 0x254   : > { %s1314_s23 = sld [smem:[#allocation8_spill]]  ;;  %s1318_s18 = smov %s984_s19 }
 0x255   : > { %s1315_s24 = sld [smem:[#allocation9_spill]]  ;;  %s1319_s19 = smov %s988_s20 }
 0x256   : > { %s1316_s25 = sld [smem:[#allocation10_spill]]  ;;  %s1320_s20 = smov %s1136_s14 }
 0x257   : > { %s1317_s26 = sld [smem:[#allocation11_spill]]  ;;  %17 = sbr.rel (!%p15_p1) target bundleno = 8 (0x8), region = 135 }
 0x25c   :  { %617 = vsyncpa [#allocation5], 1 }
 0x25d   :  { %619 = vsyncpa [#allocation5 + $0x1], 1 }

</bundles_post_ra>
